<compile_context>
chip_gen: v5e
topology: v5e:2x2
jax: 0.10.0
libtpu: 0.0.40
codegen_flags: <defaults>
</compile_context>

<pallas_src>
import functools

import jax
import jax.numpy as jnp
from jax.experimental import pallas as pl
from jax.experimental.pallas import tpu as pltpu

_LANES = 128


def _round_up(x, m):
    return ((x + m - 1) // m) * m


def _mlp_unit_kernel(*refs, batch_norm: bool, dropout_rate: float,
                     eps: float = 1e-5):
    """One MlpUnitLayer forward on a (B, TILE_N) output tile.

    refs layout (built dynamically by the wrapper):
      x_ref (B, K), w_ref (K, TILE_N),
      [b_ref (1, TILE_N)               if not batch_norm]
      [gamma_ref, beta_ref (1, TILE_N) if batch_norm]
      [bits_ref (B, TILE_N) uint32     if dropout_rate > 0]
      o_ref (B, TILE_N)
    """
    it = iter(refs)
    x_ref = next(it)
    w_ref = next(it)
    b_ref = None if batch_norm else next(it)
    gamma_ref = next(it) if batch_norm else None
    beta_ref = next(it) if batch_norm else None
    bits_ref = next(it) if dropout_rate > 0.0 else None
    o_ref = next(it)

    # ---- Linear on the MXU: bf16 operands, f32 accumulation ----
    y = jnp.dot(x_ref[...].astype(jnp.bfloat16),
                w_ref[...].astype(jnp.bfloat16),
                preferred_element_type=jnp.float32)

    if batch_norm:
        # Training-mode BatchNorm1d over the (full, resident) batch axis.
        # Linear bias skipped entirely (cancels under mean subtraction);
        # gamma folded into inv_std -> one full-tile VPU mul saved.
        mean = jnp.mean(y, axis=0, keepdims=True)
        centered = y - mean
        var = jnp.mean(centered * centered, axis=0, keepdims=True)  # biased
        scale = jax.lax.rsqrt(var + eps) * gamma_ref[...]
        y = centered * scale + beta_ref[...]
    else:
        y = y + b_ref[...]

    if dropout_rate > 0.0:
        # ReLU fused into the dropout select; keep-decision is an integer
        # threshold compare directly on the raw uint32 bits.
        thresh = jnp.uint32(min(int(round(dropout_rate * 4294967296.0)),
                                4294967295))
        keep = bits_ref[...] >= thresh
        inv_keep = jnp.float32(1.0 / (1.0 - dropout_rate))
        y = jnp.where(keep & (y > 0.0), y * inv_keep, 0.0)
    else:
        y = jnp.maximum(y, 0.0)

    o_ref[...] = y.astype(o_ref.dtype)


def mlp_unit_forward(x, w_t, b, gamma, beta, rng_key, *, batch_norm,
                     dropout_rate, tile_n=512, out_dtype=jnp.float32):
    """x: (B, K) f32; w_t: (K, N) f32 (PyTorch Linear weight pre-transposed);
    b/gamma/beta: (1, N) f32; rng_key: jax PRNG key (used iff dropout > 0)."""
    B, K = x.shape
    N = w_t.shape[1]

    # Lane-dense output: pad N to a multiple of 128 lanes, slice back after.
    n_pad = _round_up(N, _LANES)
    # Tile width: multiple of 128 that divides n_pad, capped (v7x-VMEM safe).
    tile_n = min(_round_up(min(tile_n, n_pad), _LANES), n_pad)
    while n_pad % tile_n:
        tile_n -= _LANES

    pad = n_pad - N
    if pad:
        w_t = jnp.pad(w_t, ((0, 0), (0, pad)))
        b = jnp.pad(b, ((0, 0), (0, pad)))
        gamma = jnp.pad(gamma, ((0, 0), (0, pad)), constant_values=1.0)
        beta = jnp.pad(beta, ((0, 0), (0, pad)))

    grid = (n_pad // tile_n,)

    in_specs = [
        pl.BlockSpec((B, K), lambda j: (0, 0)),        # X: full batch, resident
        pl.BlockSpec((K, tile_n), lambda j: (0, j)),   # W tile, auto-pipelined
    ]
    args = [x, w_t]
    if batch_norm:
        in_specs += [pl.BlockSpec((1, tile_n), lambda j: (0, j)),
                     pl.BlockSpec((1, tile_n), lambda j: (0, j))]
        args += [gamma, beta]
    else:
        in_specs.append(pl.BlockSpec((1, tile_n), lambda j: (0, j)))
        args.append(b)
    if dropout_rate > 0.0:
        # TODO(synk): on real TPU the mask could be drawn in-kernel with
        # pltpu.prng_seed(seed + pl.program_id(0)) / pltpu.prng_random_bits to
        # avoid this DMA; host-side jax.random bits are used so the kernel also
        # runs under the CPU/interpret backend (which lacks the TPU PRNG prim).
        bits = jax.random.bits(rng_key, (B, n_pad), dtype=jnp.uint32)
        in_specs.append(pl.BlockSpec((B, tile_n), lambda j: (0, j)))
        args.append(bits)

    # Rough VMEM budget (resident X + double-buffered tiles), clamped so the
    # same kernel fits v7x's 64 MiB as well as v5e/v6e's 128 MiB.
    tile_bytes = (2 * K * tile_n * 4 + 2 * B * tile_n * 4
                  + (2 * B * tile_n * 4 if dropout_rate > 0.0 else 0)
                  + 4 * 2 * tile_n * 4)
    vmem_limit = min(max(2 * (B * K * 4 + tile_bytes) + (2 << 20), 8 << 20),
                     48 << 20)

    kernel = functools.partial(_mlp_unit_kernel, batch_norm=batch_norm,
                               dropout_rate=dropout_rate)
    out = pl.pallas_call(
        kernel,
        out_shape=jax.ShapeDtypeStruct((B, n_pad), out_dtype),
        grid=grid,
        in_specs=in_specs,
        out_specs=pl.BlockSpec((B, tile_n), lambda j: (0, j)),
        compiler_params=pltpu.CompilerParams(
            dimension_semantics=("parallel",),  # shard N tiles over v7x 2 TCs
            vmem_limit_bytes=vmem_limit),
    )(*args)
    return out[:, :N] if pad else out


def mlp_layer_forward(x, layer_params, rng_key, *, batch_norm, dropout_rate):
    """MlpLayer.forward: chain of MlpUnitLayer kernels."""
    for (w_t, b, gamma, beta) in layer_params:
        rng_key, sub = jax.random.split(rng_key)
        x = mlp_unit_forward(x, w_t, b, gamma, beta, sub,
                             batch_norm=batch_norm, dropout_rate=dropout_rate)
    return x


if __name__ == "__main__":
    key = jax.random.PRNGKey(0)

    batch = 8
    input_dim = 32
    hidden_units = (64, 32)
    batch_norm = True
    dropout_rates = 0.2

    # Deterministic parameter init mirroring MlpUnitLayer._init_weight_:
    #   xavier_normal_ on Linear weight, zeros on bias; BN gamma=1, beta=0.
    dims = (input_dim,) + tuple(hidden_units)
    layer_params = []
    for i in range(len(hidden_units)):
        key, kw = jax.random.split(key)
        fan_in, fan_out = dims[i], dims[i + 1]
        xavier_std = (2.0 / (fan_in + fan_out)) ** 0.5
        w = jax.random.normal(kw, (fan_out, fan_in), jnp.float32) * xavier_std
        layer_params.append((
            jnp.transpose(w),                           # (fan_in, fan_out)
            jnp.zeros((1, fan_out), jnp.float32),       # bias
            jnp.ones((1, fan_out), jnp.float32),        # BN gamma
            jnp.zeros((1, fan_out), jnp.float32),       # BN beta
        ))

    key, kx, kdrop = jax.random.split(key, 3)
    x = jax.random.normal(kx, (batch, input_dim), jnp.float32)

    out = mlp_layer_forward(x, layer_params, kdrop,
                            batch_norm=batch_norm, dropout_rate=dropout_rates)
    jax.block_until_ready(out)
    assert out.shape == (batch, hidden_units[-1])
    print("KERNEL_OK")
</pallas_src>

<mosaic_0001>
module attributes {stable_mosaic.version = 11 : i64} {
  func.func @_mlp_unit_kernel(%arg0: i32, %arg1: memref<8x32xf32, #tpu.memory_space<vmem>>, %arg2: memref<32x128xf32, #tpu.memory_space<vmem>>, %arg3: memref<1x128xf32, #tpu.memory_space<vmem>>, %arg4: memref<1x128xf32, #tpu.memory_space<vmem>>, %arg5: memref<8x128xi32, #tpu.memory_space<vmem>>, %arg6: memref<8x128xf32, #tpu.memory_space<vmem>>) attributes {dimension_semantics = [#tpu.dimension_semantics<parallel>], iteration_bounds = array<i64: 1>, scalar_prefetch = 0 : i64, scratch_operands = 0 : i64, tpu.core_type = #tpu.core_type<tc>, window_params = [{pipeline_mode = #tpu.pipeline_mode<synchronous>, transform_indices = @transform_0, window_bounds = array<i64: 8, 32>}, {transform_indices = @transform_1, window_bounds = array<i64: 32, 128>}, {transform_indices = @transform_2, window_bounds = array<i64: 1, 128>}, {transform_indices = @transform_3, window_bounds = array<i64: 1, 128>}, {transform_indices = @transform_4, window_bounds = array<i64: 8, 128>}, {transform_indices = @transform_5, window_bounds = array<i64: 8, 128>}]} {
    %c0 = arith.constant 0 : index
    %c0_0 = arith.constant 0 : index
    %0 = vector.load %arg1[%c0, %c0_0] : memref<8x32xf32, #tpu.memory_space<vmem>>, vector<8x32xf32>
    %1 = arith.truncf %0 : vector<8x32xf32> to vector<8x32xbf16>
    %c0_1 = arith.constant 0 : index
    %c0_2 = arith.constant 0 : index
    %2 = vector.load %arg2[%c0_1, %c0_2] : memref<32x128xf32, #tpu.memory_space<vmem>>, vector<32x128xf32>
    %3 = arith.truncf %2 : vector<32x128xf32> to vector<32x128xbf16>
    %cst = arith.constant dense<0.000000e+00> : vector<8x128xf32>
    %4 = tpu.matmul %1, %3, %cst {dimension_numbers = #tpu.dot_dimension_numbers<[1], [0], [0], [1], [0, 0, 1, 1], [], []>} : vector<8x32xbf16>, vector<32x128xbf16>, vector<8x128xf32> -> vector<8x128xf32>
    %cst_3 = arith.constant dense<0.000000e+00> : vector<128xf32>
    %5 = vector.multi_reduction <add>, %4, %cst_3 [0] : vector<8x128xf32> to vector<128xf32>
    %6 = vector.shape_cast %5 : vector<128xf32> to vector<1x128xf32>
    %cst_4 = arith.constant 8.000000e+00 : f32
    %7 = vector.broadcast %cst_4 : f32 to vector<1x128xf32>
    %8 = arith.divf %6, %7 : vector<1x128xf32>
    %9 = vector.broadcast %8 : vector<1x128xf32> to vector<8x128xf32>
    %10 = arith.subf %4, %9 : vector<8x128xf32>
    %11 = arith.mulf %10, %10 : vector<8x128xf32>
    %cst_5 = arith.constant dense<0.000000e+00> : vector<128xf32>
    %12 = vector.multi_reduction <add>, %11, %cst_5 [0] : vector<8x128xf32> to vector<128xf32>
    %13 = vector.shape_cast %12 : vector<128xf32> to vector<1x128xf32>
    %cst_6 = arith.constant 8.000000e+00 : f32
    %14 = vector.broadcast %cst_6 : f32 to vector<1x128xf32>
    %15 = arith.divf %13, %14 : vector<1x128xf32>
    %cst_7 = arith.constant 9.99999974E-6 : f32
    %16 = vector.broadcast %cst_7 : f32 to vector<1x128xf32>
    %17 = arith.addf %15, %16 : vector<1x128xf32>
    %18 = math.rsqrt %17 : vector<1x128xf32>
    %c0_8 = arith.constant 0 : index
    %c0_9 = arith.constant 0 : index
    %19 = vector.load %arg3[%c0_8, %c0_9] : memref<1x128xf32, #tpu.memory_space<vmem>>, vector<1x128xf32>
    %20 = arith.mulf %18, %19 : vector<1x128xf32>
    %21 = vector.broadcast %20 : vector<1x128xf32> to vector<8x128xf32>
    %22 = arith.mulf %10, %21 : vector<8x128xf32>
    %c0_10 = arith.constant 0 : index
    %c0_11 = arith.constant 0 : index
    %23 = vector.load %arg4[%c0_10, %c0_11] : memref<1x128xf32, #tpu.memory_space<vmem>>, vector<1x128xf32>
    %24 = vector.broadcast %23 : vector<1x128xf32> to vector<8x128xf32>
    %25 = arith.addf %22, %24 : vector<8x128xf32>
    %c0_12 = arith.constant 0 : index
    %c0_13 = arith.constant 0 : index
    %26 = vector.load %arg5[%c0_12, %c0_13] : memref<8x128xi32, #tpu.memory_space<vmem>>, vector<8x128xi32>
    %c858993459_i32 = arith.constant 858993459 : i32
    %27 = vector.broadcast %c858993459_i32 : i32 to vector<8x128xi32>
    %28 = arith.cmpi uge, %26, %27 : vector<8x128xi32>
    %cst_14 = arith.constant 0.000000e+00 : f32
    %29 = vector.broadcast %cst_14 : f32 to vector<8x128xf32>
    %30 = arith.cmpf ogt, %25, %29 : vector<8x128xf32>
    %31 = arith.andi %28, %30 : vector<8x128xi1>
    %cst_15 = arith.constant 1.250000e+00 : f32
    %32 = vector.broadcast %cst_15 : f32 to vector<8x128xf32>
    %33 = arith.mulf %25, %32 : vector<8x128xf32>
    %cst_16 = arith.constant 0.000000e+00 : f32
    %34 = vector.broadcast %cst_16 : f32 to vector<8x128xf32>
    %35 = arith.select %31, %33, %34 : vector<8x128xi1>, vector<8x128xf32>
    %c0_17 = arith.constant 0 : index
    %c0_18 = arith.constant 0 : index
    %36 = vector.load %arg6[%c0_17, %c0_18] : memref<8x128xf32, #tpu.memory_space<vmem>>, vector<8x128xf32>
    tpu.vector_store %arg6[%c0_17, %c0_18], %35 {strides = array<i32>} : memref<8x128xf32, #tpu.memory_space<vmem>>, vector<8x128xf32>,
    return
  }
  func.func @transform_0(%arg0: i32) -> (i32, i32) {
    %c0_i32 = arith.constant 0 : i32
    %c0_i32_0 = arith.constant 0 : i32
    %c0_i32_1 = arith.constant 0 : i32
    return %c0_i32, %c0_i32_0 : i32, i32
  }
  func.func @transform_1(%arg0: i32) -> (i32, i32) {
    %c0_i32 = arith.constant 0 : i32
    %c0_i32_0 = arith.constant 0 : i32
    return %c0_i32, %arg0 : i32, i32
  }
  func.func @transform_2(%arg0: i32) -> (i32, i32) {
    %c0_i32 = arith.constant 0 : i32
    %c0_i32_0 = arith.constant 0 : i32
    return %c0_i32, %arg0 : i32, i32
  }
  func.func @transform_3(%arg0: i32) -> (i32, i32) {
    %c0_i32 = arith.constant 0 : i32
    %c0_i32_0 = arith.constant 0 : i32
    return %c0_i32, %arg0 : i32, i32
  }
  func.func @transform_4(%arg0: i32) -> (i32, i32) {
    %c0_i32 = arith.constant 0 : i32
    %c0_i32_0 = arith.constant 0 : i32
    return %c0_i32, %arg0 : i32, i32
  }
  func.func @transform_5(%arg0: i32) -> (i32, i32) {
    %c0_i32 = arith.constant 0 : i32
    %c0_i32_0 = arith.constant 0 : i32
    return %c0_i32, %arg0 : i32, i32
  }
}

</mosaic_0001>

<bundles_post_ra>
// kernel: tpu_custom_call.1
= control target key start
LH: loop header
LB: loop body
LE: loop exit
PB: predicated region body
PF: predicated region fallthrough
CT: control target
= control target key end

     0   :  { %10 = vsyncpa [#allocation3], 0  ;;  %s331_s0 = inlined_call_operand.hbm [shape: f32[8,32], index: 0, kind: input, shape index: {}]   ;;  %s332_s1 = inlined_call_operand.hbm [shape: f32[32,128], index: 1, kind: input, shape index: {}]   ;;  %s333_s2 = inlined_call_operand.vmem [shape: f32[1,128], index: 2, kind: input, shape index: {}]   ;;  %s334_s3 = inlined_call_operand.vmem [shape: f32[1,128], index: 3, kind: input, shape index: {}]   ;;  %s335_s4 = inlined_call_operand.hbm [shape: u32[8,128], index: 4, kind: input, shape index: {}]   ;;  %s336_s5 = inlined_call_operand.hbm [shape: f32[8,128], index: 5, kind: output, shape index: {}]  }
   0x1   :  { %11 = vsyncpa [#allocation6], 0  ;;  %s28_s20 = sshll.u32 %s332_s1, 4  ;;  %s29_s20 = int_to_ptr.hbm [resolvable:$true] %s28_s20 }
   0x2   :  { %12 = vsyncpa [#allocation4], 0  ;;  %s276_s21 = smov [#allocation5]   ;;  %s18_s25 = sshll.u32 %s331_s0, 4  ;;  %s19_s25 = int_to_ptr.hbm [resolvable:$true] %s18_s25 }
   0x3   :  { %s30_s22 = sshll.u32 %s276_s21, 4  ;;  %s277_s26 = smov 128   ;;  %s31_s22 = int_to_ptr.vmem [resolvable:$true] %s30_s22 }
   0x4   :  { %s278_s27 = smov 8   ;;  %s279_s28 = smov [#allocation2]  }
   0x5   :  { %36 = dma.hbm_to_vmem [thread:$0]  %s29_s20, 512, %s31_s22, [#allocation6], %s277_s26, %s277_s26, %s278_s27  }
   0x6   :  { %s20_s29 = sshll.u32 %s279_s28, 4  ;;  %s46_s7 = sshll.u32 %s335_s4, 4  ;;  %s21_s29 = int_to_ptr.vmem [resolvable:$true] %s20_s29  ;;  %s47_s7 = int_to_ptr.hbm [resolvable:$true] %s46_s7 }
   0x7   :  { %23 = dma.hbm_to_vmem [thread:$0]  %s19_s25, 128, %s21_s29, [#allocation3]  }
   0x8   :  { %s280_s1 = smov [#allocation7]  }
   0x9   :  { %s48_s8 = sshll.u32 %s280_s1, 4  ;;  %s49_s8 = int_to_ptr.vmem [resolvable:$true] %s48_s8 }
   0xa   :  { %51 = dma.hbm_to_vmem [thread:$0]  %s47_s7, 128, %s49_s8, [#allocation6]  }
   0xb   :  { %270 = dma.done.wait [#allocation3], 128  }
   0xc   :  { %271 = vsyncadd [#allocation3], 4294967168 }
   0xd   :  { %272 = dma.done.wait [#allocation6], 640  }
   0xe   :  { %273 = vsyncadd [#allocation6], 4294966656  ;;  %v69_v0 = vld [vmem:[#allocation5 + $0x10] sm:$0xff]  ;;  %v70_v1 = vld [vmem:[#allocation5 + $0x18] sm:$0xff]  ;;  %vm73_vm0 = vcmask 261120   ;;  %v281_v8 = vmov 8.0  }
   0xf   :  { %v67_v2 = vld [vmem:[#allocation5] sm:$0xff]  ;;  %v72_v3 = vpack.c.bf16 %v70_v1, %v69_v0  ;;  %v68_v4 = vld [vmem:[#allocation5 + $0x8] sm:$0xff]  ;;  %v65_v6 = vld [vmem:[#allocation2] sm:$0xff]  ;;  %170 = vrcp.f32 %v281_v8  ;;  %s282_s11 = smov [#allocation8]   ;;  %s149_s15 = sshll.u32 %s336_s5, 4  ;;  %s150_s15 = int_to_ptr.hbm [resolvable:$true] %s149_s15 }
  0x10   :  { %v71_v5 = vpack.c.bf16 %v68_v4, %v67_v2  ;;  %v66_v7 = vpack.c.bf16 %v65_v6, %v65_v6  ;;  %v124_v40 = vld [vmem:[%s333_s2] sm:$0x1]  ;;  %v133_v42 = vld [vmem:[#allocation7] sm:$0xff]  ;;  %s147_s12 = sshll.u32 %s282_s11, 4  ;;  %s148_s12 = int_to_ptr.vmem [resolvable:$true] %s147_s12 }
  0x11   :  { %83 = vmatpush.bf16.msra.mxu0 %v72_v3  ;;  %v169_v45 = vld [vmem:[%s334_s3] ss:$0 sm:$0xff]  ;;  %v161_v46 = vxor.u32 2147483648, %v133_v42 }
  0x13   :  { %vm136_vm5 = vcmp.ge.s32.totalorder %v161_v46, 3006477107 }
  0x15   :  { %84 = vmatpush.bf16.msra.mxu0 %v71_v5  ;;  %v171_v9 = vpop.eup %170 }
  0x16   :  { %v97_v10 = vmul.f32 8.0, %v171_v9  ;;  %vm101_vm1 = vweird.f32 %v171_v9 }
  0x18   :  { %160 = vmatmul.msk.bf16.vlgmr.msra.gmra.mxu0 %vm73_vm0, %v66_v7  ;;  %v98_v11 = vsub.f32 1.0, %v97_v10 }
  0x1a   :  { %v99_v14 = vmul.f32 %v171_v9, %v98_v11 }
  0x1c   :  { %v100_v17 = vadd.f32 %v171_v9, %v99_v14 }
  0x1e   :  { %v102_v21 = vsel %vm101_vm1, %v171_v9, %v100_v17 }
  0x95   :  { %v86_v12 = vpop.f32.mrf.mxu0 }
  0x96   :  { %v90_v13 = vrot.slane %v86_v12, 4 }
  0x98   :  { %v91_v15 = vadd.f32 %v90_v13, %v86_v12 }
  0x9a   :  { %v92_v16 = vrot.slane %v91_v15, 2 }
  0x9c   :  { %v93_v18 = vadd.f32 %v92_v16, %v91_v15 }
  0x9d   :  { %v88_v19 = vpop.f32.mrf.mxu0 }
  0x9e   :  { %v94_v20 = vrot.slane %v93_v18, 1 }
  0xa0   :  { %v95_v22 = vadd.f32 %v94_v20, %v93_v18 }
  0xa2   :  { %v103_v23 = vmul.f32 %v102_v21, %v95_v22 }
  0xa4   :  { %v104_v24 = vsub.f32 %v86_v12, %v103_v23 }
  0xa6   :  { %v105_v25 = vmul.f32 %v104_v24, %v104_v24 }
  0xa8   :  { %v106_v26 = vrot.slane %v105_v25, 4 }
  0xaa   :  { %v107_v27 = vadd.f32 %v106_v26, %v105_v25 }
  0xac   :  { %v108_v28 = vrot.slane %v107_v27, 2 }
  0xae   :  { %v109_v29 = vadd.f32 %v108_v28, %v107_v27 }
  0xb0   :  { %v110_v30 = vrot.slane %v109_v29, 1 }
  0xb2   :  { %v111_v31 = vadd.f32 %v110_v30, %v109_v29 }
  0xb4   :  { %v112_v32 = vmul.f32 %v111_v31, %v102_v21 }
  0xb6   :  { %v113_v33 = vadd.f32 1e-05, %v112_v32 }
  0xb8   :  { %172 = vrsqrt.f32 %v113_v33  ;;  %vm120_vm3 = vweird.f32 %v113_v33 }
  0xbe   :  { %v173_v34 = vpop.eup %172 }
  0xbf   :  { %v115_v35 = vmul.f32 %v173_v34, %v113_v33  ;;  %vm121_vm2 = vweird.f32 %v173_v34 }
  0xc0   :  { %vm122_vm4 = vmor %vm120_vm3, %vm121_vm2 }
  0xc1   :  { %v116_v36 = vmul.f32 %v173_v34, %v115_v35 }
  0xc3   :  { %v117_v37 = vmul.f32 0.5, %v116_v36 }
  0xc5   :  { %v118_v38 = vsub.f32 1.5, %v117_v37 }
  0xc7   :  { %v119_v39 = vmul.f32 %v173_v34, %v118_v38 }
  0xc9   :  { %v123_v41 = vsel %vm122_vm4, %v173_v34, %v119_v39 }
  0xca   :  { %v125_v43 = vmul.f32 %v124_v40, %v123_v41 }
  0xcc   :  { %v126_v44 = vperm.slane %v125_v43, 0 }
  0xce   :  { %v127_v47 = vmul.f32 %v126_v44, %v104_v24 }
  0xd0   :  { %v132_v48 = vadd.f32 %v169_v45, %v127_v47 }
  0xd2   :  { %vm137_vm6 = vcmp.gt.f32.partialorder %v132_v48, 0.0  ;;  %v139_v49 = vmul.f32 1.25, %v132_v48 }
  0xd3   :  { %vm138_vm7 = vmand %vm136_vm5, %vm137_vm6 }
  0xd4   :  { %v140_v50 = vsel %vm138_vm7, %v139_v49, 0.0 }
  0xd5   :  { %141 = vst [vmem:[#allocation8] sm:$0xff] %v140_v50 }
  0xd6   :  { %152 = dma.vmem_to_hbm [thread:$0]  %s148_s12, 128, %s150_s15, [#allocation4]  }
  0xd7   :  { %274 = dma.done.wait [#allocation4], 128  }
  0xd8   :  { %275 = vsyncadd [#allocation4], 4294967168 }
  0xd9   :  { %157 = vsyncpa [#allocation3], 1 }
  0xda   :  { %158 = vsyncpa [#allocation6], 1 }
  0xdb   :  { %159 = vsyncpa [#allocation4], 1 }

</bundles_post_ra>
